<compile_context>
chip_gen: v7x
topology: tpu7x:2x2x1
jax: 0.10.0
libtpu: 0.0.40
codegen_flags: <defaults>
</compile_context>

<pallas_src>
import jax
import jax.numpy as jnp
import numpy as np
from jax.experimental import pallas as pl
from jax.experimental.pallas import tpu as pltpu


# ---------------------------------------------------------------------------
# Model hyper-parameters (the "config")
# ---------------------------------------------------------------------------
B = 8                                # batch (small test shape)
VIS_C, VIS_H, VIS_W = 4, 16, 16      # visual branch input  (NCHW)
SP_C,  SP_H,  SP_W  = 2, 16, 16      # spatial branch input (NCHW)
VIS_IN = VIS_C * VIS_H * VIS_W       # 1024
SP_IN  = SP_C * SP_H * SP_W          # 512
X_IN   = SP_IN + VIS_IN              # 1536 (concatenated input stream)
D_SP, D_VIS = 128, 128               # branch output feature dims
D_CAT = D_SP + D_VIS                 # concatenated feature dim (256)

RELATION_KEYS = ("lr", "mr", "cr")
# combined_branch_{k}_classifier_dimension
CLS_DIMS = {
    "lr": (D_CAT, 64, 16),   # Linear -> ReLU -> Linear -> Sigmoid
    "mr": (D_CAT, 64, 16),   # Linear -> ReLU -> Linear -> Sigmoid
    "cr": (D_CAT, 64, 8),    # Linear -> ReLU -> Linear -> Softmax(dim=1)
}

HID_DIMS = [CLS_DIMS[k][1] for k in RELATION_KEYS]        # [64, 64, 64]
OUT_DIMS = [CLS_DIMS[k][2] for k in RELATION_KEYS]        # [16, 16, 8]
HID_TOTAL = int(sum(HID_DIMS))                            # 192
OUT_TOTAL = int(sum(OUT_DIMS))                            # 40
OUT_PAD = 128                                             # lane-dense output
HID_OFFS = [int(x) for x in np.cumsum([0] + HID_DIMS)[:-1]]
OUT_OFFS = [int(x) for x in np.cumsum([0] + OUT_DIMS)[:-1]]
CR_OFF = OUT_OFFS[RELATION_KEYS.index("cr")]              # 32
CR_DIM = OUT_DIMS[RELATION_KEYS.index("cr")]              # 8


# ---------------------------------------------------------------------------
# Pallas kernel: full fused forward
# ---------------------------------------------------------------------------
def ican_v2_kernel(
    x_ref,                           # [TB, 1536] bf16  (xs | xv concatenated)
    ws_ref, wv_ref, bbr_ref,         # branch linears            (bf16 w, f32 b)
    w1s_ref, w1v_ref, b1_ref,        # fused classifier layer 1  (bf16 w, f32 b)
    w2_ref, b2_ref,                  # fused block-diag layer 2  (bf16 w, f32 b)
    out_ref,                         # [TB, OUT_PAD] f32 (lr|mr|cr|pad)
):
    x = x_ref[...]                   # bf16
    xs = x[:, :SP_IN]                # lane-128-aligned slice
    xv = x[:, SP_IN:]

    # Branch feature extractors: Linear + ReLU.  bf16 x bf16 -> f32 on the MXU.
    fs = jnp.dot(xs, ws_ref[...], preferred_element_type=jnp.float32)
    fs = jnp.maximum(fs + bbr_ref[:, :D_SP], 0.0)
    fv = jnp.dot(xv, wv_ref[...], preferred_element_type=jnp.float32)
    fv = jnp.maximum(fv + bbr_ref[:, D_SP:], 0.0)

    # Fused classifier layer 1 for all three relations:
    #   cat([fs, fv]) @ W1_all  ==  fs @ W1s_all + fv @ W1v_all
    h = (jnp.dot(fs.astype(jnp.bfloat16), w1s_ref[...],
                 preferred_element_type=jnp.float32)
         + jnp.dot(fv.astype(jnp.bfloat16), w1v_ref[...],
                   preferred_element_type=jnp.float32)
         + b1_ref[...])
    h = jnp.maximum(h, 0.0)

    # Fused (block-diagonal) classifier layer 2 -> logits [TB, OUT_PAD]
    logits = (jnp.dot(h.astype(jnp.bfloat16), w2_ref[...],
                      preferred_element_type=jnp.float32)
              + b2_ref[...])

    # Lane-index mask for the 'cr' (softmax) columns.
    col = jax.lax.broadcasted_iota(jnp.int32, logits.shape, 1)
    is_cr = jnp.logical_and(col >= CR_OFF, col < CR_OFF + CR_DIM)

    # Numerically stable sigmoid:  sig(x) = where(x>=0, 1, e^-|x|) / (1 + e^-|x|)
    # (approx reciprocal -> EUP slot; error ~1e-3, well within tolerance)
    e_na = jnp.exp(-jnp.abs(logits))
    sig = jnp.where(logits >= 0.0, 1.0, e_na) * pl.reciprocal(1.0 + e_na,
                                                              approx=True)

    # Masked softmax over the 'cr' lanes only (dim=1).
    # EXACT division here so each row sums to 1 to f32 precision.
    cr_logits = jnp.where(is_cr, logits, jnp.float32(-1e30))
    m = jnp.max(cr_logits, axis=1, keepdims=True)
    e_cr = jnp.where(is_cr, jnp.exp(cr_logits - m), 0.0)
    denom = jnp.sum(e_cr, axis=1, keepdims=True)
    soft = e_cr / denom

    # lr/mr lanes -> sigmoid, cr lanes -> softmax, padded lanes -> don't care.
    out_ref[...] = jnp.where(is_cr, soft, sig)


# ---------------------------------------------------------------------------
# Parameter construction (deterministic, synthetic) + host-side fusion/packing
# ---------------------------------------------------------------------------
def _linear_params(key, fan_in, fan_out):
    # Mimic torch.nn.Linear default init: U(-1/sqrt(fan_in), 1/sqrt(fan_in)).
    kw, kb = jax.random.split(key)
    bound = 1.0 / np.sqrt(fan_in)
    w = jax.random.uniform(kw, (fan_in, fan_out), jnp.float32, -bound, bound)
    b = jax.random.uniform(kb, (1, fan_out), jnp.float32, -bound, bound)
    return w, b


def make_params(key):
    """Returns fused, packed parameters (weights in bf16, biases in f32)."""
    keys = jax.random.split(key, 8)
    ws, bs = _linear_params(keys[0], SP_IN, D_SP)     # spatial branch
    wv, bv = _linear_params(keys[1], VIS_IN, D_VIS)   # visual branch
    b_branch = jnp.concatenate([bs, bv], axis=1)      # [1, 256]

    w1s_list, w1v_list, b1_list = [], [], []
    w2_all = jnp.zeros((HID_TOTAL, OUT_PAD), jnp.float32)
    b2_all = jnp.zeros((1, OUT_PAD), jnp.float32)
    for i, k in enumerate(RELATION_KEYS):
        d_in, d_hid, d_out = CLS_DIMS[k]
        w1, b1 = _linear_params(keys[2 + 2 * i], d_in, d_hid)
        w2, b2 = _linear_params(keys[3 + 2 * i], d_hid, d_out)
        # split W1 into spatial / visual halves (concat order: [spatial, visual])
        w1s_list.append(w1[:D_SP])
        w1v_list.append(w1[D_SP:])
        b1_list.append(b1)
        ho, oo = HID_OFFS[i], OUT_OFFS[i]
        w2_all = w2_all.at[ho:ho + d_hid, oo:oo + d_out].set(w2)
        b2_all = b2_all.at[:, oo:oo + d_out].set(b2)

    w1s_all = jnp.concatenate(w1s_list, axis=1)   # [128, 192]
    w1v_all = jnp.concatenate(w1v_list, axis=1)   # [128, 192]
    b1_all = jnp.concatenate(b1_list, axis=1)     # [1, 192]

    # Large weights -> bf16 (true bf16 MXU path, half the DMA); biases stay f32.
    return (
        ws.astype(jnp.bfloat16), wv.astype(jnp.bfloat16), b_branch,
        w1s_all.astype(jnp.bfloat16), w1v_all.astype(jnp.bfloat16), b1_all,
        w2_all.astype(jnp.bfloat16), b2_all,
    )


# ---------------------------------------------------------------------------
# Wrapper: glue (flatten + concat + bf16 cast) + pallas_call + output slicing
# ---------------------------------------------------------------------------
def ican_v2_forward(x_spatial, x_visual, params):
    bn = x_spatial.shape[0]
    xs = x_spatial.reshape(bn, SP_IN)
    xv = x_visual.reshape(bn, VIS_IN)
    # Single fused bf16 input stream (one DMA per grid step).
    x_cat = jnp.concatenate([xs, xv], axis=1).astype(jnp.bfloat16)  # [bn,1536]

    # Batch tile: large enough to amortize per-grid-step overhead; for big
    # batches bn//tb >= 2 so the "parallel" axis can shard across v7x's 2 TCs.
    tb = min(bn, 512)
    assert bn % tb == 0, "batch must be a multiple of the batch tile"
    grid = (bn // tb,)

    (ws, wv, b_branch, w1s_all, w1v_all, b1_all, w2_all, b2_all) = params

    def batch_spec(cols):
        return pl.BlockSpec((tb, cols), lambda i: (i, 0))

    def const_spec(arr):
        # Constant block index: weights/biases stay VMEM-resident across tiles.
        return pl.BlockSpec(arr.shape, lambda i: (0, 0))

    out = pl.pallas_call(
        ican_v2_kernel,
        out_shape=jax.ShapeDtypeStruct((bn, OUT_PAD), jnp.float32),
        grid=grid,
        in_specs=[
            batch_spec(X_IN),
            const_spec(ws), const_spec(wv), const_spec(b_branch),
            const_spec(w1s_all), const_spec(w1v_all), const_spec(b1_all),
            const_spec(w2_all), const_spec(b2_all),
        ],
        out_specs=pl.BlockSpec((tb, OUT_PAD), lambda i: (i, 0)),
        compiler_params=pltpu.CompilerParams(dimension_semantics=("parallel",)),
    )(x_cat, ws, wv, b_branch, w1s_all, w1v_all, b1_all, w2_all, b2_all)

    res = {}
    for i, k in enumerate(RELATION_KEYS):
        oo, od = OUT_OFFS[i], OUT_DIMS[i]
        res[k] = out[:, oo:oo + od]
    return {"combined": res}


# ---------------------------------------------------------------------------
# Pure-JAX reference (per-classifier MLPs, same bf16 activation/weight casts)
# ---------------------------------------------------------------------------
def ican_v2_reference(x_spatial, x_visual, params):
    (ws, wv, b_branch, w1s_all, w1v_all, b1_all, w2_all, b2_all) = params

    bn = x_spatial.shape[0]
    xs = x_spatial.reshape(bn, SP_IN).astype(jnp.bfloat16)
    xv = x_visual.reshape(bn, VIS_IN).astype(jnp.bfloat16)
    fs = jnp.maximum(
        jnp.dot(xs, ws, preferred_element_type=jnp.float32)
        + b_branch[:, :D_SP], 0.0)
    fv = jnp.maximum(
        jnp.dot(xv, wv, preferred_element_type=jnp.float32)
        + b_branch[:, D_SP:], 0.0)
    cat = jnp.concatenate([fs, fv], axis=-1).astype(jnp.bfloat16)   # [bn, 256]

    res = {}
    for i, k in enumerate(RELATION_KEYS):
        _, d_hid, d_out = CLS_DIMS[k]
        ho, oo = HID_OFFS[i], OUT_OFFS[i]
        w1 = jnp.concatenate(
            [w1s_all[:, ho:ho + d_hid], w1v_all[:, ho:ho + d_hid]], axis=0)
        b1 = b1_all[:, ho:ho + d_hid]
        w2 = w2_all[ho:ho + d_hid, oo:oo + d_out]
        b2 = b2_all[:, oo:oo + d_out]
        h = jnp.maximum(
            jnp.dot(cat, w1, preferred_element_type=jnp.float32) + b1, 0.0)
        logits = jnp.dot(h.astype(jnp.bfloat16), w2,
                         preferred_element_type=jnp.float32) + b2
        if k == "cr":
            res[k] = jax.nn.softmax(logits, axis=1)
        else:
            res[k] = jax.nn.sigmoid(logits)
    return {"combined": res}


# ---------------------------------------------------------------------------
if __name__ == "__main__":
    key = jax.random.PRNGKey(0)
    k_sp, k_vis, k_param = jax.random.split(key, 3)

    x_spatial = jax.random.normal(k_sp, (B, SP_C, SP_H, SP_W), jnp.float32)
    x_visual = jax.random.normal(k_vis, (B, VIS_C, VIS_H, VIS_W), jnp.float32)
    params = make_params(k_param)

    out = ican_v2_forward(x_spatial, x_visual, params)
    out = jax.block_until_ready(out)

    ref = ican_v2_reference(x_spatial, x_visual, params)
    for k in RELATION_KEYS:
        np.testing.assert_allclose(
            np.asarray(out["combined"][k]),
            np.asarray(ref["combined"][k]),
            rtol=2e-2, atol=2e-3,
        )
    # softmax output rows now sum to 1 to f32 precision (exact division)
    np.testing.assert_allclose(
        np.asarray(out["combined"]["cr"]).sum(axis=1), np.ones(B), atol=1e-4
    )

    print("KERNEL_OK")
</pallas_src>

<mosaic_0001>
module attributes {stable_mosaic.version = 11 : i64} {
  func.func @ican_v2_kernel(%arg0: i32, %arg1: memref<8x1536xbf16, #tpu.memory_space<vmem>>, %arg2: memref<512x128xbf16, #tpu.memory_space<vmem>>, %arg3: memref<1024x128xbf16, #tpu.memory_space<vmem>>, %arg4: memref<1x256xf32, #tpu.memory_space<vmem>>, %arg5: memref<128x192xbf16, #tpu.memory_space<vmem>>, %arg6: memref<128x192xbf16, #tpu.memory_space<vmem>>, %arg7: memref<1x192xf32, #tpu.memory_space<vmem>>, %arg8: memref<192x128xbf16, #tpu.memory_space<vmem>>, %arg9: memref<1x128xf32, #tpu.memory_space<vmem>>, %arg10: memref<8x128xf32, #tpu.memory_space<vmem>>) attributes {dimension_semantics = [#tpu.dimension_semantics<parallel>], iteration_bounds = array<i64: 1>, scalar_prefetch = 0 : i64, scratch_operands = 0 : i64, tpu.core_type = #tpu.core_type<tc>, window_params = [{transform_indices = @transform_0, window_bounds = array<i64: 8, 1536>}, {pipeline_mode = #tpu.pipeline_mode<synchronous>, transform_indices = @transform_1, window_bounds = array<i64: 512, 128>}, {pipeline_mode = #tpu.pipeline_mode<synchronous>, transform_indices = @transform_2, window_bounds = array<i64: 1024, 128>}, {pipeline_mode = #tpu.pipeline_mode<synchronous>, transform_indices = @transform_3, window_bounds = array<i64: 1, 256>}, {pipeline_mode = #tpu.pipeline_mode<synchronous>, transform_indices = @transform_4, window_bounds = array<i64: 128, 192>}, {pipeline_mode = #tpu.pipeline_mode<synchronous>, transform_indices = @transform_5, window_bounds = array<i64: 128, 192>}, {pipeline_mode = #tpu.pipeline_mode<synchronous>, transform_indices = @transform_6, window_bounds = array<i64: 1, 192>}, {pipeline_mode = #tpu.pipeline_mode<synchronous>, transform_indices = @transform_7, window_bounds = array<i64: 192, 128>}, {pipeline_mode = #tpu.pipeline_mode<synchronous>, transform_indices = @transform_8, window_bounds = array<i64: 1, 128>}, {transform_indices = @transform_9, window_bounds = array<i64: 8, 128>}]} {
    %c0 = arith.constant 0 : index
    %c0_0 = arith.constant 0 : index
    %0 = vector.load %arg1[%c0, %c0_0] : memref<8x1536xbf16, #tpu.memory_space<vmem>>, vector<8x1536xbf16>
    %1 = vector.extract_strided_slice %0 {offsets = [0, 0], sizes = [8, 512], strides = [1, 1]} : vector<8x1536xbf16> to vector<8x512xbf16>
    %2 = vector.extract_strided_slice %0 {offsets = [0, 512], sizes = [8, 1024], strides = [1, 1]} : vector<8x1536xbf16> to vector<8x1024xbf16>
    %c0_1 = arith.constant 0 : index
    %c0_2 = arith.constant 0 : index
    %3 = vector.load %arg2[%c0_1, %c0_2] : memref<512x128xbf16, #tpu.memory_space<vmem>>, vector<512x128xbf16>
    %cst = arith.constant dense<0.000000e+00> : vector<8x128xf32>
    %4 = tpu.matmul %1, %3, %cst {dimension_numbers = #tpu.dot_dimension_numbers<[1], [0], [0], [1], [0, 0, 1, 1], [], []>} : vector<8x512xbf16>, vector<512x128xbf16>, vector<8x128xf32> -> vector<8x128xf32>
    %c0_3 = arith.constant 0 : index
    %c0_4 = arith.constant 0 : index
    %5 = vector.load %arg4[%c0_3, %c0_4] : memref<1x256xf32, #tpu.memory_space<vmem>>, vector<1x128xf32>
    %6 = vector.broadcast %5 : vector<1x128xf32> to vector<8x128xf32>
    %7 = arith.addf %4, %6 : vector<8x128xf32>
    %cst_5 = arith.constant 0.000000e+00 : f32
    %8 = vector.broadcast %cst_5 : f32 to vector<8x128xf32>
    %9 = arith.maximumf %7, %8 : vector<8x128xf32>
    %c0_6 = arith.constant 0 : index
    %c0_7 = arith.constant 0 : index
    %10 = vector.load %arg3[%c0_6, %c0_7] : memref<1024x128xbf16, #tpu.memory_space<vmem>>, vector<1024x128xbf16>
    %cst_8 = arith.constant dense<0.000000e+00> : vector<8x128xf32>
    %11 = tpu.matmul %2, %10, %cst_8 {dimension_numbers = #tpu.dot_dimension_numbers<[1], [0], [0], [1], [0, 0, 1, 1], [], []>} : vector<8x1024xbf16>, vector<1024x128xbf16>, vector<8x128xf32> -> vector<8x128xf32>
    %c0_9 = arith.constant 0 : index
    %c128 = arith.constant 128 : index
    %12 = vector.load %arg4[%c0_9, %c128] : memref<1x256xf32, #tpu.memory_space<vmem>>, vector<1x128xf32>
    %13 = vector.broadcast %12 : vector<1x128xf32> to vector<8x128xf32>
    %14 = arith.addf %11, %13 : vector<8x128xf32>
    %cst_10 = arith.constant 0.000000e+00 : f32
    %15 = vector.broadcast %cst_10 : f32 to vector<8x128xf32>
    %16 = arith.maximumf %14, %15 : vector<8x128xf32>
    %17 = arith.truncf %9 : vector<8x128xf32> to vector<8x128xbf16>
    %c0_11 = arith.constant 0 : index
    %c0_12 = arith.constant 0 : index
    %18 = vector.load %arg5[%c0_11, %c0_12] : memref<128x192xbf16, #tpu.memory_space<vmem>>, vector<128x192xbf16>
    %cst_13 = arith.constant dense<0.000000e+00> : vector<8x192xf32>
    %19 = tpu.matmul %17, %18, %cst_13 {dimension_numbers = #tpu.dot_dimension_numbers<[1], [0], [0], [1], [0, 0, 1, 1], [], []>} : vector<8x128xbf16>, vector<128x192xbf16>, vector<8x192xf32> -> vector<8x192xf32>
    %20 = arith.truncf %16 : vector<8x128xf32> to vector<8x128xbf16>
    %c0_14 = arith.constant 0 : index
    %c0_15 = arith.constant 0 : index
    %21 = vector.load %arg6[%c0_14, %c0_15] : memref<128x192xbf16, #tpu.memory_space<vmem>>, vector<128x192xbf16>
    %cst_16 = arith.constant dense<0.000000e+00> : vector<8x192xf32>
    %22 = tpu.matmul %20, %21, %cst_16 {dimension_numbers = #tpu.dot_dimension_numbers<[1], [0], [0], [1], [0, 0, 1, 1], [], []>} : vector<8x128xbf16>, vector<128x192xbf16>, vector<8x192xf32> -> vector<8x192xf32>
    %23 = arith.addf %19, %22 : vector<8x192xf32>
    %c0_17 = arith.constant 0 : index
    %c0_18 = arith.constant 0 : index
    %24 = vector.load %arg7[%c0_17, %c0_18] : memref<1x192xf32, #tpu.memory_space<vmem>>, vector<1x192xf32>
    %25 = vector.broadcast %24 : vector<1x192xf32> to vector<8x192xf32>
    %26 = arith.addf %23, %25 : vector<8x192xf32>
    %cst_19 = arith.constant 0.000000e+00 : f32
    %27 = vector.broadcast %cst_19 : f32 to vector<8x192xf32>
    %28 = arith.maximumf %26, %27 : vector<8x192xf32>
    %29 = arith.truncf %28 : vector<8x192xf32> to vector<8x192xbf16>
    %c0_20 = arith.constant 0 : index
    %c0_21 = arith.constant 0 : index
    %30 = vector.load %arg8[%c0_20, %c0_21] : memref<192x128xbf16, #tpu.memory_space<vmem>>, vector<192x128xbf16>
    %cst_22 = arith.constant dense<0.000000e+00> : vector<8x128xf32>
    %31 = tpu.matmul %29, %30, %cst_22 {dimension_numbers = #tpu.dot_dimension_numbers<[1], [0], [0], [1], [0, 0, 1, 1], [], []>} : vector<8x192xbf16>, vector<192x128xbf16>, vector<8x128xf32> -> vector<8x128xf32>
    %c0_23 = arith.constant 0 : index
    %c0_24 = arith.constant 0 : index
    %32 = vector.load %arg9[%c0_23, %c0_24] : memref<1x128xf32, #tpu.memory_space<vmem>>, vector<1x128xf32>
    %33 = vector.broadcast %32 : vector<1x128xf32> to vector<8x128xf32>
    %34 = arith.addf %31, %33 : vector<8x128xf32>
    %35 = tpu.iota {dimensions = array<i32: 1>} : vector<8x128xi32>
    %c32_i32 = arith.constant 32 : i32
    %36 = vector.broadcast %c32_i32 : i32 to vector<8x128xi32>
    %37 = arith.cmpi sge, %35, %36 : vector<8x128xi32>
    %c40_i32 = arith.constant 40 : i32
    %38 = vector.broadcast %c40_i32 : i32 to vector<8x128xi32>
    %39 = arith.cmpi slt, %35, %38 : vector<8x128xi32>
    %40 = arith.andi %37, %39 : vector<8x128xi1>
    %41 = math.absf %34 : vector<8x128xf32>
    %cst_25 = arith.constant 0.000000e+00 : f32
    %42 = vector.broadcast %cst_25 : f32 to vector<8x128xf32>
    %43 = arith.subf %42, %41 : vector<8x128xf32>
    %44 = math.exp %43 : vector<8x128xf32>
    %cst_26 = arith.constant 0.000000e+00 : f32
    %45 = vector.broadcast %cst_26 : f32 to vector<8x128xf32>
    %46 = arith.cmpf oge, %34, %45 : vector<8x128xf32>
    %cst_27 = arith.constant 1.000000e+00 : f32
    %47 = vector.broadcast %cst_27 : f32 to vector<8x128xf32>
    %48 = arith.select %46, %47, %44 : vector<8x128xi1>, vector<8x128xf32>
    %cst_28 = arith.constant 1.000000e+00 : f32
    %49 = vector.broadcast %cst_28 : f32 to vector<8x128xf32>
    %50 = arith.addf %49, %44 : vector<8x128xf32>
    %51 = tpu.reciprocal %50 {approx = true} : vector<8x128xf32> -> vector<8x128xf32>
    %52 = arith.mulf %48, %51 : vector<8x128xf32>
    %cst_29 = arith.constant -1.000000e+30 : f32
    %53 = vector.broadcast %cst_29 : f32 to vector<8x128xf32>
    %54 = arith.select %40, %34, %53 : vector<8x128xi1>, vector<8x128xf32>
    %cst_30 = arith.constant dense<0xFF800000> : vector<8xf32>
    %55 = vector.multi_reduction <maximumf>, %54, %cst_30 [1] : vector<8x128xf32> to vector<8xf32>
    %56 = vector.shape_cast %55 : vector<8xf32> to vector<8x1xf32>
    %57 = vector.broadcast %56 : vector<8x1xf32> to vector<8x128xf32>
    %58 = arith.subf %54, %57 : vector<8x128xf32>
    %59 = math.exp %58 : vector<8x128xf32>
    %cst_31 = arith.constant 0.000000e+00 : f32
    %60 = vector.broadcast %cst_31 : f32 to vector<8x128xf32>
    %61 = arith.select %40, %59, %60 : vector<8x128xi1>, vector<8x128xf32>
    %cst_32 = arith.constant dense<0.000000e+00> : vector<8xf32>
    %62 = vector.multi_reduction <add>, %61, %cst_32 [1] : vector<8x128xf32> to vector<8xf32>
    %63 = vector.shape_cast %62 : vector<8xf32> to vector<8x1xf32>
    %64 = vector.broadcast %63 : vector<8x1xf32> to vector<8x128xf32>
    %65 = arith.divf %61, %64 : vector<8x128xf32>
    %66 = arith.select %40, %65, %52 : vector<8x128xi1>, vector<8x128xf32>
    %c0_33 = arith.constant 0 : index
    %c0_34 = arith.constant 0 : index
    %67 = vector.load %arg10[%c0_33, %c0_34] : memref<8x128xf32, #tpu.memory_space<vmem>>, vector<8x128xf32>
    tpu.vector_store %arg10[%c0_33, %c0_34], %66 {strides = array<i32>} : memref<8x128xf32, #tpu.memory_space<vmem>>, vector<8x128xf32>,
    return
  }
  func.func @transform_0(%arg0: i32) -> (i32, i32) {
    %c0_i32 = arith.constant 0 : i32
    %c0_i32_0 = arith.constant 0 : i32
    return %arg0, %c0_i32 : i32, i32
  }
  func.func @transform_1(%arg0: i32) -> (i32, i32) {
    %c0_i32 = arith.constant 0 : i32
    %c0_i32_0 = arith.constant 0 : i32
    %c0_i32_1 = arith.constant 0 : i32
    return %c0_i32, %c0_i32_0 : i32, i32
  }
  func.func @transform_2(%arg0: i32) -> (i32, i32) {
    %c0_i32 = arith.constant 0 : i32
    %c0_i32_0 = arith.constant 0 : i32
    %c0_i32_1 = arith.constant 0 : i32
    return %c0_i32, %c0_i32_0 : i32, i32
  }
  func.func @transform_3(%arg0: i32) -> (i32, i32) {
    %c0_i32 = arith.constant 0 : i32
    %c0_i32_0 = arith.constant 0 : i32
    %c0_i32_1 = arith.constant 0 : i32
    return %c0_i32, %c0_i32_0 : i32, i32
  }
  func.func @transform_4(%arg0: i32) -> (i32, i32) {
    %c0_i32 = arith.constant 0 : i32
    %c0_i32_0 = arith.constant 0 : i32
    %c0_i32_1 = arith.constant 0 : i32
    return %c0_i32, %c0_i32_0 : i32, i32
  }
  func.func @transform_5(%arg0: i32) -> (i32, i32) {
    %c0_i32 = arith.constant 0 : i32
    %c0_i32_0 = arith.constant 0 : i32
    %c0_i32_1 = arith.constant 0 : i32
    return %c0_i32, %c0_i32_0 : i32, i32
  }
  func.func @transform_6(%arg0: i32) -> (i32, i32) {
    %c0_i32 = arith.constant 0 : i32
    %c0_i32_0 = arith.constant 0 : i32
    %c0_i32_1 = arith.constant 0 : i32
    return %c0_i32, %c0_i32_0 : i32, i32
  }
  func.func @transform_7(%arg0: i32) -> (i32, i32) {
    %c0_i32 = arith.constant 0 : i32
    %c0_i32_0 = arith.constant 0 : i32
    %c0_i32_1 = arith.constant 0 : i32
    return %c0_i32, %c0_i32_0 : i32, i32
  }
  func.func @transform_8(%arg0: i32) -> (i32, i32) {
    %c0_i32 = arith.constant 0 : i32
    %c0_i32_0 = arith.constant 0 : i32
    %c0_i32_1 = arith.constant 0 : i32
    return %c0_i32, %c0_i32_0 : i32, i32
  }
  func.func @transform_9(%arg0: i32) -> (i32, i32) {
    %c0_i32 = arith.constant 0 : i32
    %c0_i32_0 = arith.constant 0 : i32
    return %arg0, %c0_i32 : i32, i32
  }
}

</mosaic_0001>

<bundles_post_ra>
// kernel: tpu_custom_call.1
= control target key start
LH: loop header
LB: loop body
LE: loop exit
PB: predicated region body
PF: predicated region fallthrough
CT: control target
= control target key end

     0   :  { %14 = vsyncpa [#allocation3], 0  ;;  %s2521_s0 = inlined_call_operand.hbm [shape: bf16[8,1536], index: 0, kind: input, shape index: {}]   ;;  %s2522_s1 = inlined_call_operand.vmem [shape: bf16[512,128], index: 1, kind: input, shape index: {}]   ;;  %s2523_s2 = inlined_call_operand.hbm [shape: bf16[1024,128], index: 2, kind: input, shape index: {}]   ;;  %s2524_s3 = inlined_call_operand.vmem [shape: f32[1,256], index: 3, kind: input, shape index: {}]   ;;  %s2525_s4 = inlined_call_operand.vmem [shape: bf16[128,192], index: 4, kind: input, shape index: {}]   ;;  %s2526_s5 = inlined_call_operand.vmem [shape: bf16[128,192], index: 5, kind: input, shape index: {}]   ;;  %s2527_s6 = inlined_call_operand.vmem [shape: f32[1,192], index: 6, kind: input, shape index: {}]   ;;  %s2528_s7 = inlined_call_operand.vmem [shape: bf16[192,128], index: 7, kind: input, shape index: {}]   ;;  %s2529_s8 = inlined_call_operand.vmem [shape: f32[1,128], index: 8, kind: input, shape index: {}]   ;;  %s2530_s9 = inlined_call_operand.hbm [shape: f32[8,128], index: 9, kind: output, shape index: {}]  }
   0x1   :  { %15 = vsyncpa [#allocation6], 0 }
   0x2   :  { %16 = vsyncpa [#allocation4], 0  ;;  %s2158_s30 = smov [#allocation2]   ;;  %s2159_s11 = smov [#allocation5]  }
   0x3   :  { %s23_s10 = sshll.u32 %s2158_s30, 4  ;;  %s34_s12 = sshll.u32 %s2159_s11, 4  ;;  %s24_s10 = int_to_ptr.vmem [resolvable:$true] %s23_s10  ;;  %s2214_s12 = int_to_ptr.vmem [resolvable:$true] %s34_s12 }
   0x4   :  { %s2086_s15 = scalar_lea.hbm %s2521_s0, 768 }
   0x5   :  { %p2087_p0 = scmp.ne.s32.totalorder %s2521_s0, %s2086_s15  ;;  %p2090_p1 = scmp.lt.u32.totalorder %s2086_s15, %s2521_s0 }
   0x7   :  { %p2092_p2 = pnand %p2090_p1, %p2087_p0 }
   0x9   :  { %2095 = shalt.err (!%p2092_p2)
}
   0xa   :  { %s2096_s20 = scalar_lea.vmem %s24_s10, 768  ;;  %p2101_p4 = scmp.lt.s32.totalorder %s24_s10, %s24_s10 }
   0xb   :  { %p2097_p3 = scmp.ne.s32.totalorder %s24_s10, %s2096_s20  ;;  %p2102_p5 = scmp.lt.s32.totalorder %s2096_s20, %s2096_s20 }
   0xd   :  { %p2103_p6 = por %p2102_p5, %p2101_p4 }
   0xf   :  { %p2104_p7 = pnand %p2103_p6, %p2097_p3 }
  0x11   :  { %2107 = shalt.err (!%p2104_p7)
}
  0x12   :  { %26 = dma.hbm_to_vmem [thread:$0]  %s2521_s0, 768, %s24_s10, [#allocation3]  }
  0x13   :  { %s2108_s25 = scalar_lea.hbm %s2523_s2, 8192 }
  0x14   :  { %p2109_p8 = scmp.ne.s32.totalorder %s2523_s2, %s2108_s25  ;;  %p2112_p9 = scmp.lt.u32.totalorder %s2108_s25, %s2523_s2 }
  0x16   :  { %p2114_p10 = pnand %p2112_p9, %p2109_p8 }
  0x18   :  { %2117 = shalt.err (!%p2114_p10)
}
  0x19   :  { %s2118_s30 = scalar_lea.vmem %s2214_s12, 8192  ;;  %p2123_p12 = scmp.lt.s32.totalorder %s2214_s12, %s2214_s12 }
  0x1a   :  { %p2119_p11 = scmp.ne.s32.totalorder %s2214_s12, %s2118_s30  ;;  %p2124_p13 = scmp.lt.s32.totalorder %s2118_s30, %s2118_s30 }
  0x1c   :  { %p2125_p0 = por %p2124_p13, %p2123_p12 }
  0x1e   :  { %p2126_p1 = pnand %p2125_p0, %p2119_p11 }
  0x20   :  { %2129 = shalt.err (!%p2126_p1)
}
  0x21   :  { %s2160_s0 = smov 64   ;;  %s2161_s10 = smov 4  }
  0x22   :  { %40 = dma.hbm_to_vmem [thread:$0]  %s2523_s2, 8192, %s2214_s12, [#allocation6], %s2160_s0, %s2160_s0, %s2161_s10  }
  0x23   :  { %2152 = dma.done.wait [#allocation3], 768  }
  0x24   :  { %2153 = vsyncadd [#allocation3], 4294966528 }
  0x25   :  { %2154 = dma.done.wait [#allocation6], 8192  }
  0x26   :  { %2155 = vsyncadd [#allocation6], 4294959104  ;;  %v1910_v0 = vld [vmem:[%s2522_s1 + $0x40] sm:$0xff]   ;;  %v1912_v2 = vld [vmem:[%s2522_s1 + $0x48] sm:$0xff]   ;;  %vm1529_vm0 = vcmask 523264  }
  0x27   :  { %v1911_v1 = vld [vmem:[%s2522_s1] sm:$0xff]   ;;  %1772 = vmatprep.subr.bf16.mxu1 %v1910_v0  ;;  %v1913_v3 = vld [vmem:[%s2522_s1 + $0x8] sm:$0xff]   ;;  %v1914_v4 = vld [vmem:[%s2522_s1 + $0x50] sm:$0xff]  }
  0x28   :  { %1773 = vmatpush3.bf16.msra.mxu1 %v1911_v1  ;;  %v1915_v5 = vld [vmem:[%s2522_s1 + $0x10] sm:$0xff]   ;;  %v1916_v6 = vld [vmem:[%s2522_s1 + $0x58] sm:$0xff]   ;;  %v1918_v8 = vld [vmem:[%s2522_s1 + $0x60] sm:$0xff]  }
  0x29   :  { %1774 = vmatprep.subr.bf16.mxu1 %v1912_v2  ;;  %v1917_v7 = vld [vmem:[%s2522_s1 + $0x18] sm:$0xff]   ;;  %v1919_v9 = vld [vmem:[%s2522_s1 + $0x20] sm:$0xff]   ;;  %v1920_v10 = vld [vmem:[%s2522_s1 + $0x68] sm:$0xff]  }
  0x2a   :  { %v60_v11 = vld [vmem:[#allocation2] sm:$0xff]  ;;  %v1921_v12 = vld [vmem:[%s2522_s1 + $0x28] sm:$0xff]   ;;  %v1922_v14 = vld [vmem:[%s2522_s1 + $0x70] sm:$0xff]  }
  0x2b   :  { %v1618_v13 = vcombine.high %v60_v11, %v60_v11  ;;  %v1930_v15 = vld [vmem:[#allocation5 + $0x40] sm:$0xff]   ;;  %v1924_v18 = vld [vmem:[%s2522_s1 + $0x78] sm:$0xff]   ;;  %v1928_v22 = vld [vmem:[%s2522_s1 + $0xc0] sm:$0xff]   ;;  %v1617_v26 = vcombine.low %v60_v11, %v60_v11 }
  0x2c   :  { %1775 = vmatpush3.bf16.msra.mxu1 %v1913_v3  ;;  %v1931_v16 = vld [vmem:[#allocation5] sm:$0xff]   ;;  %1816 = vmatprep.subr.bf16.mxu0 %v1930_v15  ;;  %v1934_v19 = vld [vmem:[#allocation5 + $0x48] sm:$0xff]   ;;  %v1938_v23 = vld [vmem:[#allocation5 + $0x50] sm:$0xff]  }
  0x2d   :  { %1776 = vmatprep.subr.bf16.mxu1 %v1914_v4  ;;  %375 = vmatprep.mubr.bf16.mxu1 %v1618_v13  ;;  %v1923_v17 = vld [vmem:[%s2522_s1 + $0x30] sm:$0xff]   ;;  %v1935_v20 = vld [vmem:[#allocation5 + $0x8] sm:$0xff]   ;;  %v1939_v24 = vld [vmem:[#allocation5 + $0x10] sm:$0xff]  }
  0x2e   :  { %1817 = vmatpush3.bf16.msra.mxu0 %v1931_v16  ;;  %v1925_v21 = vld [vmem:[%s2522_s1 + $0x38] sm:$0xff]   ;;  %v1929_v25 = vld [vmem:[%s2522_s1 + $0x80] sm:$0xff]   ;;  %v1932_v27 = vld [vmem:[%s2522_s1 + $0xc8] sm:$0xff]  }
  0x2f   :  { %1818 = vmatprep.subr.bf16.mxu0 %v1934_v19  ;;  %v1942_v28 = vld [vmem:[#allocation5 + $0x58] sm:$0xff]   ;;  %v1936_v31 = vld [vmem:[%s2522_s1 + $0xd0] sm:$0xff]   ;;  %v1940_v35 = vld [vmem:[%s2522_s1 + $0xd8] sm:$0xff]  }
  0x30   :  { %1777 = vmatpush3.bf16.msra.mxu1 %v1915_v5  ;;  %v1943_v29 = vld [vmem:[#allocation5 + $0x18] sm:$0xff]   ;;  %v1946_v32 = vld [vmem:[#allocation5 + $0x60] sm:$0xff]   ;;  %v1950_v36 = vld [vmem:[#allocation5 + $0x68] sm:$0xff]  }
  0x31   :  { %1778 = vmatprep.subr.bf16.mxu1 %v1916_v6  ;;  %v1933_v30 = vld [vmem:[%s2522_s1 + $0x88] sm:$0xff]   ;;  %v1947_v33 = vld [vmem:[#allocation5 + $0x20] sm:$0xff]   ;;  %v1951_v37 = vld [vmem:[#allocation5 + $0x28] sm:$0xff]  }
  0x32   :  { %1819 = vmatpush3.bf16.msra.mxu0 %v1935_v20  ;;  %v1937_v34 = vld [vmem:[%s2522_s1 + $0x90] sm:$0xff]   ;;  %v1941_v38 = vld [vmem:[%s2522_s1 + $0x98] sm:$0xff]   ;;  %v1944_v39 = vld [vmem:[%s2522_s1 + $0xe0] sm:$0xff]  }
  0x33   :  { %1820 = vmatprep.subr.bf16.mxu0 %v1938_v23  ;;  %v1954_v40 = vld [vmem:[#allocation5 + $0x70] sm:$0xff]   ;;  %v1948_v43 = vld [vmem:[%s2522_s1 + $0xe8] sm:$0xff]   ;;  %v1952_v49 = vld [vmem:[%s2522_s1 + $0xf0] sm:$0xff]  }
  0x34   :  { %1779 = vmatpush3.bf16.msra.mxu1 %v1917_v7  ;;  %v1955_v41 = vld [vmem:[#allocation5 + $0x30] sm:$0xff]   ;;  %v1958_v44 = vld [vmem:[#allocation5 + $0x78] sm:$0xff]   ;;  %v62_v50 = vld [vmem:[#allocation2 + $0x10] sm:$0xff] }
  0x35   :  { %1780 = vmatprep.subr.bf16.mxu1 %v1918_v8  ;;  %v1945_v42 = vld [vmem:[%s2522_s1 + $0xa0] sm:$0xff]   ;;  %v61_v45 = vld [vmem:[#allocation2 + $0x8] sm:$0xff]  ;;  %v1654_v51 = vcombine.low %v62_v50, %v62_v50  ;;  %v1655_v52 = vcombine.high %v62_v50, %v62_v50  ;;  %v1966_v53 = vld [vmem:[#allocation5 + $0x140] sm:$0xff]  }
  0x36   :  { %1821 = vmatpush3.bf16.msra.mxu0 %v1939_v24  ;;  %v1620_v46 = vcombine.high %v61_v45, %v61_v45  ;;  %v1961_v47 = vld [vmem:[#allocation5 + $0x38] sm:$0xff]   ;;  %v1967_v54 = vld [vmem:[#allocation5 + $0x100] sm:$0xff]   ;;  %v1956_v56 = vld [vmem:[%s2522_s1 + $0xf8] sm:$0xff]   ;;  %v1619_v0 = vcombine.low %v61_v45, %v61_v45 }
  0x37   :  { %1822 = vmatprep.subr.bf16.mxu0 %v1942_v28  ;;  %v1949_v48 = vld [vmem:[%s2522_s1 + $0xa8] sm:$0xff]   ;;  %v1953_v55 = vld [vmem:[%s2522_s1 + $0xb0] sm:$0xff]   ;;  %1003 = vmatprep.mubr.bf16.mxu0 %v1655_v52  ;;  %v1970_v57 = vld [vmem:[#allocation5 + $0x148] sm:$0xff]  }
  0x38   :  { %1781 = vmatpush3.bf16.msra.mxu1 %v1919_v9  ;;  %v1971_v58 = vld [vmem:[#allocation5 + $0x108] sm:$0xff]   ;;  %v1962_v60 = vld [vmem:[#allocation5 + $0xc0] sm:$0xff]   ;;  %v1974_v61 = vld [vmem:[#allocation5 + $0x150] sm:$0xff]  }
  0x39   :  { %1782 = vmatprep.subr.bf16.mxu1 %v1920_v10  ;;  %v1957_v59 = vld [vmem:[%s2522_s1 + $0xb8] sm:$0xff]   ;;  %v1975_v62 = vld [vmem:[#allocation5 + $0x110] sm:$0xff]   ;;  %v1963_v63 = vld [vmem:[#allocation5 + $0x80] sm:$0xff]  }
  0x3a   :  { %1823 = vmatpush3.bf16.msra.mxu0 %v1943_v29  ;;  %v1968_v1 = vld [vmem:[#allocation5 + $0xc8] sm:$0xff]   ;;  %v1978_v2 = vld [vmem:[#allocation5 + $0x158] sm:$0xff]   ;;  %v1972_v5 = vld [vmem:[#allocation5 + $0xd0] sm:$0xff]  }
  0x3b   :  { %1824 = vmatprep.subr.bf16.mxu0 %v1946_v32  ;;  %v1979_v3 = vld [vmem:[#allocation5 + $0x118] sm:$0xff]   ;;  %v1969_v4 = vld [vmem:[#allocation5 + $0x88] sm:$0xff]   ;;  %v1982_v6 = vld [vmem:[#allocation5 + $0x160] sm:$0xff]  }
  0x3c   :  { %1783 = vmatpush3.bf16.msra.mxu1 %v1921_v12  ;;  %v1983_v7 = vld [vmem:[#allocation5 + $0x120] sm:$0xff]   ;;  %v1973_v8 = vld [vmem:[#allocation5 + $0x90] sm:$0xff]   ;;  %v1976_v9 = vld [vmem:[#allocation5 + $0xd8] sm:$0xff]  }
  0x3d   :  { %1784 = vmatprep.subr.bf16.mxu1 %v1922_v14  ;;  %v1986_v10 = vld [vmem:[#allocation5 + $0x168] sm:$0xff]   ;;  %v1977_v12 = vld [vmem:[#allocation5 + $0x98] sm:$0xff]   ;;  %v1980_v13 = vld [vmem:[#allocation5 + $0xe0] sm:$0xff]  }
  0x3e   :  { %1825 = vmatpush3.bf16.msra.mxu0 %v1947_v33  ;;  %v1987_v11 = vld [vmem:[#allocation5 + $0x128] sm:$0xff]   ;;  %v1990_v14 = vld [vmem:[#allocation5 + $0x170] sm:$0xff]   ;;  %v1981_v16 = vld [vmem:[#allocation5 + $0xa0] sm:$0xff]  }
  0x3f   :  { %1826 = vmatprep.subr.bf16.mxu0 %v1950_v36  ;;  %v1991_v15 = vld [vmem:[#allocation5 + $0x130] sm:$0xff]   ;;  %v63_v19 = vld [vmem:[#allocation2 + $0x18] sm:$0xff]  ;;  %v1992_v28 = vld [vmem:[#allocation5 + $0xf8] sm:$0xff]  }
  0x40   :  { %1785 = vmatpush3.bf16.msra.mxu1 %v1923_v17  ;;  %v1984_v17 = vld [vmem:[#allocation5 + $0xe8] sm:$0xff]   ;;  %v1657_v20 = vcombine.high %v63_v19, %v63_v19  ;;  %v1993_v29 = vld [vmem:[#allocation5 + $0xb8] sm:$0xff]   ;;  %v2001_v32 = vld [vmem:[#allocation5 + $0x180] sm:$0xff]  }
  0x41   :  { %1786 = vmatprep.subr.bf16.mxu1 %v1924_v18  ;;  %v1994_v18 = vld [vmem:[#allocation5 + $0x178] sm:$0xff]   ;;  %v1985_v23 = vld [vmem:[#allocation5 + $0xa8] sm:$0xff]   ;;  %v2004_v36 = vld [vmem:[#allocation5 + $0x1d0] sm:$0xff]  }
  0x42   :  { %1827 = vmatpush3.bf16.msra.mxu0 %v1951_v37  ;;  %v2002_v33 = vld [vmem:[#allocation5 + $0x1c8] sm:$0xff]   ;;  %v2012_v45 = vld [vmem:[#allocation5 + $0x1f0] sm:$0xff]  }
  0x43   :  { %1828 = vmatprep.subr.bf16.mxu0 %v1954_v40  ;;  %v2007_v40 = vld [vmem:[#allocation5 + $0x198] sm:$0xff]   ;;  %v2023_v52 = vld [vmem:[%s2525_s4 + $0x14] ss:$8 sps:$4 sm:$0xff]  }
  0x44   :  { %1787 = vmatpush3.bf16.msra.mxu1 %v1925_v21  ;;  %v1997_v21 = vld [vmem:[#allocation5 + $0x138] sm:$0xff]  }
  0x45   :  { %1794 = vmatprep.subr.bf16.mxu1 %v1928_v22  ;;  %v64_v22 = vld [vmem:[#allocation2 + $0x20] sm:$0xff] }
  0x46   :  { %1829 = vmatpush3.bf16.msra.mxu0 %v1955_v41  ;;  %v1658_v24 = vcombine.low %v64_v22, %v64_v22  ;;  %v2008_v41 = vld [vmem:[#allocation5 + $0x1e0] sm:$0xff]  }
  0x47   :  { %376 = vmatmul.mubr.bf16.vlgmr.msra.gmra.mrb[0].mxu1 %v1617_v26  ;;  %1830 = vmatprep.subr.bf16.mxu0 %v1958_v44  ;;  %v1988_v26 = vld [vmem:[#allocation5 + $0xf0] sm:$0xff]   ;;  %v2011_v44 = vld [vmem:[#allocation5 + $0x1a8] sm:$0xff]  }
  0x48   :  { %1795 = vmatpush3.bf16.msra.mxu1 %v1929_v25  ;;  %415 = vmatprep.mubr.bf16.mxu1 %v1620_v46  ;;  %v1659_v25 = vcombine.high %v64_v22, %v64_v22  ;;  %v2013_v46 = vld [vmem:[#allocation5 + $0x1b0] sm:$0xff]  }
  0x49   :  { %1796 = vmatprep.subr.bf16.mxu1 %v1932_v27  ;;  %v1989_v27 = vld [vmem:[#allocation5 + $0xb0] sm:$0xff]  }
  0x4a   :  { %1831 = vmatpush3.bf16.msra.mxu0 %v1961_v47  ;;  %v2014_v47 = vld [vmem:[#allocation5 + $0x1f8] sm:$0xff]  }
  0x4b   :  { %1860 = vmatprep.subr.bf16.mxu0 %v1966_v53  ;;  %v2021_v53 = vld [vmem:[%s2525_s4 + $0x10] ss:$8 sps:$4 sm:$0xff]  }
  0x4c   :  { %1797 = vmatpush3.bf16.msra.mxu1 %v1933_v30  ;;  %v1998_v30 = vld [vmem:[#allocation5 + $0x1c0] sm:$0xff]  }
  0x4d   :  { %1798 = vmatprep.subr.bf16.mxu1 %v1936_v31  ;;  %1004 = vmatmul.mubr.bf16.vlgmr.msra.gmra.mrb[0].mxu0 %v1654_v51  ;;  %v1656_v31 = vcombine.low %v63_v19, %v63_v19  ;;  %v2018_v51 = vld [vmem:[%s2525_s4] ss:$8 sps:$4 sm:$0xff]  }
  0x4e   :  { %1861 = vmatpush3.bf16.msra.mxu0 %v1967_v54  ;;  %1083 = vmatprep.mubr.bf16.mxu0 %v1659_v25  ;;  %v2026_v54 = vld [vmem:[%s2525_s4 + $0x24] ss:$8 sps:$4 sm:$0xff]  }
  0x4f   :  { %1862 = vmatprep.subr.bf16.mxu0 %v1970_v57  ;;  %v2027_v57 = vld [vmem:[%s2525_s4 + $0x30] ss:$8 sps:$4 sm:$0xff]  }
  0x50   :  { %1799 = vmatpush3.bf16.msra.mxu1 %v1937_v34  ;;  %v2003_v34 = vld [vmem:[#allocation5 + $0x188] sm:$0xff]  }
  0x51   :  { %1800 = vmatprep.subr.bf16.mxu1 %v1940_v35  ;;  %v65_v35 = vld [vmem:[#allocation2 + $0x28] sm:$0xff] }
  0x52   :  { %1863 = vmatpush3.bf16.msra.mxu0 %v1971_v58  ;;  %v1661_v37 = vcombine.high %v65_v35, %v65_v35  ;;  %v1660_v50 = vcombine.low %v65_v35, %v65_v35  ;;  %v2032_v58 = vld [vmem:[%s2525_s4 + $0x44] ss:$8 sps:$4 sm:$0xff]  }
  0x53   :  { %1864 = vmatprep.subr.bf16.mxu0 %v1974_v61  ;;  %v2033_v61 = vld [vmem:[%s2525_s4 + $0x50] ss:$8 sps:$4 sm:$0xff]  }
  0x54   :  { %1801 = vmatpush3.bf16.msra.mxu1 %v1941_v38  ;;  %v2005_v38 = vld [vmem:[#allocation5 + $0x190] sm:$0xff]  }
  0x55   :  { %1802 = vmatprep.subr.bf16.mxu1 %v1944_v39  ;;  %v2006_v39 = vld [vmem:[#allocation5 + $0x1d8] sm:$0xff]  }
  0x56   :  { %1865 = vmatpush3.bf16.msra.mxu0 %v1975_v62  ;;  %v2038_v62 = vld [vmem:[%s2525_s4 + $0x64] ss:$8 sps:$4 sm:$0xff]  }
  0x57   :  { %1866 = vmatprep.subr.bf16.mxu0 %v1978_v2  ;;  %v2162_v2 = vmov 0  }
  0x58   :  { %1803 = vmatpush3.bf16.msra.mxu1 %v1945_v42  ;;  %v2009_v42 = vld [vmem:[#allocation5 + $0x1a0] sm:$0xff]  }
  0x59   :  { %1804 = vmatprep.subr.bf16.mxu1 %v1948_v43  ;;  %v2010_v43 = vld [vmem:[#allocation5 + $0x1e8] sm:$0xff]  }
  0x5a   :  { %1867 = vmatpush3.bf16.msra.mxu0 %v1979_v3  ;;  %v2042_v3 = vld [vmem:[%s2526_s5] ss:$8 sps:$4 sm:$0xff]  }
  0x5b   :  { %1868 = vmatprep.subr.bf16.mxu0 %v1982_v6  ;;  %v2045_v6 = vld [vmem:[%s2526_s5 + $0x10] ss:$8 sps:$4 sm:$0xff]  }
  0x5c   :  { %1805 = vmatpush3.bf16.msra.mxu1 %v1949_v48  ;;  %v2015_v48 = vld [vmem:[#allocation5 + $0x1b8] sm:$0xff]  }
  0x5d   :  { %1806 = vmatprep.subr.bf16.mxu1 %v1952_v49  ;;  %v2020_v49 = vld [vmem:[%s2525_s4 + $0x4] ss:$8 sps:$4 sm:$0xff]  }
  0x5e   :  { %1869 = vmatpush3.bf16.msra.mxu0 %v1983_v7  ;;  %v2050_v7 = vld [vmem:[%s2526_s5 + $0x24] ss:$8 sps:$4 sm:$0xff]  }
  0x5f   :  { %1870 = vmatprep.subr.bf16.mxu0 %v1986_v10  ;;  %v2051_v10 = vld [vmem:[%s2526_s5 + $0x30] ss:$8 sps:$4 sm:$0xff]  }
  0x60   :  { %1807 = vmatpush3.bf16.msra.mxu1 %v1953_v55  ;;  %v2024_v55 = vld [vmem:[%s2525_s4 + $0x20] ss:$8 sps:$4 sm:$0xff]  }
  0x61   :  { %1808 = vmatprep.subr.bf16.mxu1 %v1956_v56  ;;  %v2029_v56 = vld [vmem:[%s2525_s4 + $0x34] ss:$8 sps:$4 sm:$0xff]  }
  0x62   :  { %1871 = vmatpush3.bf16.msra.mxu0 %v1987_v11  ;;  %v2056_v11 = vld [vmem:[%s2526_s5 + $0x44] ss:$8 sps:$4 sm:$0xff]  }
  0x63   :  { %1872 = vmatprep.subr.bf16.mxu0 %v1990_v14  ;;  %v2057_v14 = vld [vmem:[%s2526_s5 + $0x50] ss:$8 sps:$4 sm:$0xff]  }
  0x64   :  { %1809 = vmatpush3.bf16.msra.mxu1 %v1957_v59  ;;  %v2030_v59 = vld [vmem:[%s2525_s4 + $0x40] ss:$8 sps:$4 sm:$0xff]  }
  0x65   :  { %1838 = vmatprep.subr.bf16.mxu1 %v1962_v60  ;;  %v2035_v60 = vld [vmem:[%s2525_s4 + $0x54] ss:$8 sps:$4 sm:$0xff]  }
  0x66   :  { %1873 = vmatpush3.bf16.msra.mxu0 %v1991_v15  ;;  %v2062_v15 = vld [vmem:[%s2526_s5 + $0x64] ss:$8 sps:$4 sm:$0xff]  }
  0x67   :  { %416 = vmatmul.mubr.bf16.vlgmr.msra.gmra.mrb[4].mxu1 %v1619_v0  ;;  %1874 = vmatprep.subr.bf16.mxu0 %v1994_v18  ;;  %v2041_v0 = vld [vmem:[%s2525_s4 + $0x74] ss:$8 sps:$4 sm:$0xff]   ;;  %v2063_v18 = vld [vmem:[%s2526_s5 + $0x70] ss:$8 sps:$4 sm:$0xff]  }
  0x68   :  { %1839 = vmatpush3.bf16.msra.mxu1 %v1963_v63  ;;  %1043 = vmatprep.mubr.bf16.mxu1 %v1657_v20  ;;  %v2036_v63 = vld [vmem:[%s2525_s4 + $0x60] ss:$8 sps:$4 sm:$0xff]  }
  0x69   :  { %1840 = vmatprep.subr.bf16.mxu1 %v1968_v1  ;;  %v2039_v1 = vld [vmem:[%s2525_s4 + $0x70] ss:$8 sps:$4 sm:$0xff]  }
  0x6a   :  { %1875 = vmatpush3.bf16.msra.mxu0 %v1997_v21 }
  0x6c   :  { %1841 = vmatpush3.bf16.msra.mxu1 %v1969_v4  ;;  %v2044_v4 = vld [vmem:[%s2526_s5 + $0x4] ss:$8 sps:$4 sm:$0xff]  }
  0x6d   :  { %1842 = vmatprep.subr.bf16.mxu1 %v1972_v5  ;;  %1084 = vmatmul.mubr.bf16.vlgmr.msra.gmra.mrb[4].mxu0 %v1658_v24  ;;  %v2047_v5 = vld [vmem:[%s2526_s5 + $0x14] ss:$8 sps:$4 sm:$0xff]  }
  0x6e   :  { %1278 = vmatprep.mubr.bf16.mxu0 %v2162_v2  ;;  %1246 = vmatprep.subr.bf16.mxu0 %v2044_v4  ;;  %v2072_v4 = vld [vmem:[%s2528_s7 + $0x30] sm:$0xff]  }
  0x6f   :  { %1247 = vmatpush1.bf16.msra.mxu0 %v2042_v3  ;;  %v2071_v3 = vld [vmem:[%s2528_s7 + $0x28] sm:$0xff]  }
  0x70   :  { %1843 = vmatpush3.bf16.msra.mxu1 %v1973_v8  ;;  %1248 = vmatprep.subr.bf16.mxu0 %v2047_v5  ;;  %v2048_v8 = vld [vmem:[%s2526_s5 + $0x20] ss:$8 sps:$4 sm:$0xff]   ;;  %v2073_v5 = vld [vmem:[%s2528_s7 + $0x38] sm:$0xff]  }
  0x71   :  { %1844 = vmatprep.subr.bf16.mxu1 %v1976_v9  ;;  %v2053_v9 = vld [vmem:[%s2526_s5 + $0x34] ss:$8 sps:$4 sm:$0xff]  }
  0x73   :  { %1249 = vmatpush1.bf16.msra.mxu0 %v2045_v6  ;;  %v2074_v6 = vld [vmem:[%s2528_s7 + $0x40] sm:$0xff]  }
  0x74   :  { %1845 = vmatpush3.bf16.msra.mxu1 %v1977_v12  ;;  %1250 = vmatprep.subr.bf16.mxu0 %v2050_v7  ;;  %v2054_v12 = vld [vmem:[%s2526_s5 + $0x40] ss:$8 sps:$4 sm:$0xff]  }
  0x75   :  { %1846 = vmatprep.subr.bf16.mxu1 %v1980_v13  ;;  %v2059_v13 = vld [vmem:[%s2526_s5 + $0x54] ss:$8 sps:$4 sm:$0xff]   ;;  %v2075_v7 = vld [vmem:[%s2528_s7 + $0x48] sm:$0xff]  }
  0x77   :  { %1251 = vmatpush1.bf16.msra.mxu0 %v2048_v8  ;;  %v2076_v8 = vld [vmem:[%s2528_s7 + $0x50] sm:$0xff]  }
  0x78   :  { %1847 = vmatpush3.bf16.msra.mxu1 %v1981_v16  ;;  %1252 = vmatprep.subr.bf16.mxu0 %v2053_v9  ;;  %v2060_v16 = vld [vmem:[%s2526_s5 + $0x60] ss:$8 sps:$4 sm:$0xff]   ;;  %v2077_v9 = vld [vmem:[%s2528_s7 + $0x58] sm:$0xff]  }
  0x79   :  { %1848 = vmatprep.subr.bf16.mxu1 %v1984_v17  ;;  %v2065_v17 = vld [vmem:[%s2526_s5 + $0x74] ss:$8 sps:$4 sm:$0xff]  }
  0x7b   :  { %1253 = vmatpush1.bf16.msra.mxu0 %v2051_v10 }
  0x7c   :  { %1849 = vmatpush3.bf16.msra.mxu1 %v1985_v23  ;;  %1254 = vmatprep.subr.bf16.mxu0 %v2056_v11 }
  0x7d   :  { %1850 = vmatprep.subr.bf16.mxu1 %v1988_v26 }
  0x7f   :  { %1255 = vmatpush1.bf16.msra.mxu0 %v2054_v12 }
  0x80   :  { %1851 = vmatpush3.bf16.msra.mxu1 %v1989_v27  ;;  %1256 = vmatprep.subr.bf16.mxu0 %v2059_v13 }
  0x81   :  { %1852 = vmatprep.subr.bf16.mxu1 %v1992_v28 }
  0x83   :  { %1257 = vmatpush1.bf16.msra.mxu0 %v2057_v14  ;;  %v1410_v14 = vlaneseq }
  0x84   :  { %1853 = vmatpush3.bf16.msra.mxu1 %v1993_v29  ;;  %1258 = vmatprep.subr.bf16.mxu0 %v2062_v15  ;;  %v1616_v29 = vld [vmem:[%s2524_s3] ss:$0 sm:$0xff] }
  0x85   :  { %1882 = vmatprep.subr.bf16.mxu1 %v1998_v30  ;;  %v1411_v15 = vshrl.u32 %v1410_v14, 7 }
  0x87   :  { %1044 = vmatmul.mubr.bf16.vlgmr.msra.gmra.mrb[8].mxu1 %v1656_v31  ;;  %1259 = vmatpush1.bf16.msra.mxu0 %v2060_v16  ;;  %v1412_v16 = vsub.s32 0, %v1411_v15 }
  0x88   :  { %1883 = vmatpush3.bf16.msra.mxu1 %v2001_v32  ;;  %1123 = vmatprep.mubr.bf16.mxu1 %v1661_v37 }
  0x89   :  { %1884 = vmatprep.subr.bf16.mxu1 %v2002_v33  ;;  %1260 = vmatprep.subr.bf16.mxu0 %v2065_v17  ;;  %v1408_v17 = vld [vmem:[%s2527_s6] sm:$0x3] }
  0x8b   :  { %1261 = vmatpush1.bf16.msra.mxu0 %v2063_v18  ;;  %v1416_v18 = vsub.s32 1, %v1411_v15 }
  0x8c   :  { %1885 = vmatpush3.bf16.msra.mxu1 %v2003_v34  ;;  %1533 = vmatprep.subr.bf16.mxu0 %v2162_v2 }
  0x8d   :  { %1886 = vmatprep.subr.bf16.mxu1 %v2004_v36 }
  0x90   :  { %1887 = vmatpush3.bf16.msra.mxu1 %v2005_v38 }
  0x91   :  { %1888 = vmatprep.subr.bf16.mxu1 %v2006_v39 }
  0x94   :  { %1889 = vmatpush3.bf16.msra.mxu1 %v2007_v40 }
  0x95   :  { %1890 = vmatprep.subr.bf16.mxu1 %v2008_v41 }
  0x98   :  { %1891 = vmatpush3.bf16.msra.mxu1 %v2009_v42 }
  0x99   :  { %1892 = vmatprep.subr.bf16.mxu1 %v2010_v43 }
  0x9c   :  { %1893 = vmatpush3.bf16.msra.mxu1 %v2011_v44  ;;  %v1653_v44 = vld [vmem:[%s2524_s3 + $0x1] ss:$0 sm:$0xff] }
  0x9d   :  { %1894 = vmatprep.subr.bf16.mxu1 %v2012_v45 }
  0xa0   :  { %1895 = vmatpush3.bf16.msra.mxu1 %v2013_v46 }
  0xa1   :  { %1896 = vmatprep.subr.bf16.mxu1 %v2014_v47 }
  0xa4   :  { %1897 = vmatpush3.bf16.msra.mxu1 %v2015_v48 }
  0xa5   :  { %1367 = vmatprep.subr.bf16.mxu1 %v2020_v49 }
  0xa7   :  { %1124 = vmatmul.mubr.bf16.vlgmr.msra.gmra.mrb[12].mxu1 %v1660_v50 }
  0xa8   :  { %1368 = vmatpush1.bf16.msra.mxu1 %v2018_v51  ;;  %1399 = vmatprep.mubr.bf16.mxu1 %v2162_v2 }
  0xa9   :  { %1369 = vmatprep.subr.bf16.mxu1 %v2023_v52 }
  0xac   :  { %1370 = vmatpush1.bf16.msra.mxu1 %v2021_v53 }
  0xad   :  { %1371 = vmatprep.subr.bf16.mxu1 %v2026_v54 }
  0xb0   :  { %1372 = vmatpush1.bf16.msra.mxu1 %v2024_v55 }
  0xb1   :  { %1373 = vmatprep.subr.bf16.mxu1 %v2029_v56 }
  0xb4   :  { %1374 = vmatpush1.bf16.msra.mxu1 %v2027_v57 }
  0xb5   :  { %1375 = vmatprep.subr.bf16.mxu1 %v2032_v58 }
  0xb8   :  { %1376 = vmatpush1.bf16.msra.mxu1 %v2030_v59 }
  0xb9   :  { %1377 = vmatprep.subr.bf16.mxu1 %v2035_v60 }
  0xbc   :  { %1378 = vmatpush1.bf16.msra.mxu1 %v2033_v61  ;;  %v2066_v61 = vld [vmem:[%s2528_s7] sm:$0xff]  }
  0xbd   :  { %1379 = vmatprep.subr.bf16.mxu1 %v2038_v62  ;;  %v2067_v62 = vld [vmem:[%s2528_s7 + $0x8] sm:$0xff]  }
  0xc0   :  { %1380 = vmatpush1.bf16.msra.mxu1 %v2036_v63  ;;  %v2068_v63 = vld [vmem:[%s2528_s7 + $0x10] sm:$0xff]  }
  0xc1   :  { %1381 = vmatprep.subr.bf16.mxu1 %v2041_v0  ;;  %v2069_v0 = vld [vmem:[%s2528_s7 + $0x18] sm:$0xff]  }
  0xc4   :  { %1382 = vmatpush1.bf16.msra.mxu1 %v2039_v1  ;;  %v2070_v1 = vld [vmem:[%s2528_s7 + $0x20] sm:$0xff]  }
 0x11a   :  { %v1788_v19 = vpop.f32.mrb[0].mxu1 }
 0x11b   :  { %v1789_v20 = vpop.f32.mrb[1].mxu1 }
 0x11c   :  { %v1790_v21 = vadd.f32 %v1789_v20, %v1788_v19  ;;  %v1791_v22 = vpop.f32.mrb[2].mxu1  ;;  %v1413_v19 = vrot.slane %v1408_v17, %v1412_v16 }
 0x11d   :  { %v1792_v23 = vpop.f32.mrb[3].mxu1 }
 0x11e   :  { %v378_v32 = vadd.f32 %v1790_v21, %v1616_v29 }
 0x120   :  { %v1832_v24 = vpop.f32.mrb[0].mxu0 }
 0x121   :  { %v1833_v25 = vpop.f32.mrb[1].mxu0 }
 0x122   :  { %v1834_v26 = vadd.f32 %v1833_v25, %v1832_v24  ;;  %v1835_v27 = vpop.f32.mrb[2].mxu0 }
 0x123   :  { %v1836_v28 = vpop.f32.mrb[3].mxu0 }
 0x124   :  { %v1006_v45 = vadd.f32 %v1834_v26, %v1653_v44 }
 0x13a   :  { %v1810_v30 = vpop.f32.mrb[4].mxu1 }
 0x13b   :  { %v1811_v31 = vpop.f32.mrb[5].mxu1 }
 0x13c   :  { %v1812_v33 = vadd.f32 %v1811_v31, %v1810_v30  ;;  %v1813_v34 = vpop.f32.mrb[6].mxu1 }
 0x13d   :  { %v1814_v35 = vpop.f32.mrb[7].mxu1 }
 0x13e   :  { %v418_v36 = vadd.f32 %v1812_v33, %v378_v32  ;;  %v1574_v32 = vand.u32 127, %v1410_v14  ;;  %v1758_v33 = vld [vmem:[%s2529_s8] ss:$0 sm:$0xff]  ;;  %s2163_s8 = smov [#allocation7]  }
 0x13f   :  { %s1606_s22 = sshll.u32 %s2163_s8, 4  ;;  %s1607_s22 = int_to_ptr.vmem [resolvable:$true] %s1606_s22 }
 0x140   :  { %v423_v37 = vmax.f32 %v418_v36, 0.0  ;;  %v1876_v39 = vpop.f32.mrb[4].mxu0  ;;  %vm1575_vm1 = vcmp.ge.s32.totalorder %v1574_v32, 32  ;;  %vm1576_vm2 = vcmp.lt.s32.totalorder %v1574_v32, 40  ;;  %s2130_s23 = scalar_lea.vmem %s1607_s22, 128  ;;  %p2135_p3 = scmp.lt.s32.totalorder %s1607_s22, %s1607_s22 }
 0x141   :  { %v1877_v40 = vpop.f32.mrb[5].mxu0  ;;  %vm2499_vm3 = vmand %vm1575_vm1, %vm1576_vm2  ;;  %p2131_p2 = scmp.ne.s32.totalorder %s1607_s22, %s2130_s23  ;;  %p2136_p4 = scmp.lt.s32.totalorder %s2130_s23, %s2130_s23 }
 0x142   :  { %v1132_v38 = vpack.c.bf16 %v423_v37, %v423_v37  ;;  %v1878_v41 = vadd.f32 %v1877_v40, %v1876_v39  ;;  %v1879_v42 = vpop.f32.mrb[6].mxu0 }
 0x143   :  { %v1880_v43 = vpop.f32.mrb[7].mxu0  ;;  %p2137_p5 = por %p2136_p4, %p2135_p3 }
 0x144   :  { %1400 = vmatmul.mubr.bf16.vlgmr.msra.gmra.mrb[16].mxu1 %v1132_v38 }
 0x145   :  { %p2138_p6 = pnand %p2137_p5, %p2131_p2 }
 0x15a   :  { %v1854_v46 = vpop.f32.mrb[8].mxu1 }
 0x15b   :  { %v1855_v47 = vpop.f32.mrb[9].mxu1 }
 0x15c   :  { %v1856_v48 = vadd.f32 %v1855_v47, %v1854_v46  ;;  %v1857_v49 = vpop.f32.mrb[10].mxu1 }
 0x15d   :  { %v1858_v50 = vpop.f32.mrb[11].mxu1 }
 0x15e   :  { %v1046_v51 = vadd.f32 %v1856_v48, %v1006_v45 }
 0x160   :  { %v1086_v52 = vadd.f32 %v1878_v41, %v1046_v51 }
 0x17a   :  { %v1898_v53 = vpop.f32.mrb[12].mxu1 }
 0x17b   :  { %v1899_v54 = vpop.f32.mrb[13].mxu1 }
 0x17c   :  { %v1900_v55 = vadd.f32 %v1899_v54, %v1898_v53  ;;  %v1901_v56 = vpop.f32.mrb[14].mxu1 }
 0x17d   :  { %v1902_v57 = vpop.f32.mrb[15].mxu1 }
 0x17e   :  { %v1126_v58 = vadd.f32 %v1900_v55, %v1086_v52 }
 0x180   :  { %v1131_v59 = vmax.f32 %v1126_v58, 0.0 }
 0x182   :  { %v1149_v60 = vpack.c.bf16 %v1131_v59, %v1131_v59 }
 0x184   :  { %1279 = vmatmul.mubr.bf16.vlgmr.msra.gmra.mrb[8].mxu0 %v1149_v60 }
 0x185   :  { %1534 = vmatpush1.bf16.msra.mxu0 %v2066_v61 }
 0x186   :  { %1535 = vmatprep.subr.bf16.mxu0 %v2162_v2 }
 0x189   :  { %1536 = vmatpush1.bf16.msra.mxu0 %v2067_v62 }
 0x18a   :  { %1537 = vmatprep.subr.bf16.mxu0 %v2162_v2 }
 0x18d   :  { %1538 = vmatpush1.bf16.msra.mxu0 %v2068_v63 }
 0x18e   :  { %1539 = vmatprep.subr.bf16.mxu0 %v2162_v2 }
 0x191   :  { %1540 = vmatpush1.bf16.msra.mxu0 %v2069_v0 }
 0x192   :  { %1541 = vmatprep.subr.bf16.mxu0 %v2162_v2 }
 0x195   :  { %1542 = vmatpush1.bf16.msra.mxu0 %v2070_v1 }
 0x196   :  { %1543 = vmatprep.subr.bf16.mxu0 %v2162_v2 }
 0x199   :  { %1544 = vmatpush1.bf16.msra.mxu0 %v2071_v3 }
 0x19a   :  { %1545 = vmatprep.subr.bf16.mxu0 %v2162_v2 }
 0x19d   :  { %1546 = vmatpush1.bf16.msra.mxu0 %v2072_v4 }
 0x19e   :  { %1547 = vmatprep.subr.bf16.mxu0 %v2162_v2 }
 0x1a1   :  { %1548 = vmatpush1.bf16.msra.mxu0 %v2073_v5 }
 0x1a2   :  { %1549 = vmatprep.subr.bf16.mxu0 %v2162_v2 }
 0x1a5   :  { %1550 = vmatpush1.bf16.msra.mxu0 %v2074_v6 }
 0x1a6   :  { %1551 = vmatprep.subr.bf16.mxu0 %v2162_v2 }
 0x1a9   :  { %1552 = vmatpush1.bf16.msra.mxu0 %v2075_v7 }
 0x1aa   :  { %1553 = vmatprep.subr.bf16.mxu0 %v2162_v2 }
 0x1ad   :  { %1554 = vmatpush1.bf16.msra.mxu0 %v2076_v8 }
 0x1ae   :  { %1555 = vmatprep.subr.bf16.mxu0 %v2162_v2  ;;  %v1417_v2 = vrot.slane %v1408_v17, %v1416_v18 }
 0x1b1   :  { %1556 = vmatpush1.bf16.msra.mxu0 %v2077_v9 }
 0x217   :  { %v1401_v10 = vpop.f32.mrb[16].mxu1 }
 0x218   :  { %v1403_v11 = vpop.f32.mrb[17].mxu1 }
 0x219   :  { %v1405_v12 = vpop.f32.mrb[18].mxu1 }
 0x21a   :  { %v1406_v13 = vpop.f32.mrb[19].mxu1 }
 0x257   :  { %v1280_v20 = vpop.f32.mrb[8].mxu0 }
 0x258   :  { %v1402_v21 = vadd.f32 %v1401_v10, %v1280_v20  ;;  %v1282_v22 = vpop.f32.mrb[9].mxu0 }
 0x259   :  { %v1404_v23 = vadd.f32 %v1403_v11, %v1282_v22  ;;  %v1284_v24 = vpop.f32.mrb[10].mxu0 }
 0x25a   :  { %v1420_v25 = vadd.f32 %v1413_v19, %v1402_v21  ;;  %v1285_v26 = vpop.f32.mrb[11].mxu0 }
 0x25b   :  { %v1421_v27 = vadd.f32 %v1417_v2, %v1404_v23 }
 0x25c   :  { %v1422_v28 = vmax.f32 %v1420_v25, 0.0 }
 0x25d   :  { %v1423_v29 = vmax.f32 %v1421_v27, 0.0 }
 0x25e   :  { %v1424_v31 = vpack.c.bf16 %v1422_v28, %v1422_v28 }
 0x25f   :  { %v1425_v30 = vpack.c.bf16 %v1423_v29, %v1423_v29 }
 0x261   :  { %1771 = vmatprep.mubr.msk.bf16.mxu0 %vm1529_vm0, %v1425_v30 }
 0x262   :  { %1566 = vmatmul.mubr.bf16.vlgmr.msra.gmra.mrb[12].mxu0 %v1424_v31 }
 0x335   :  { %v1567_v34 = vpop.f32.mrb[12].mxu0 }
 0x336   :  { %v1568_v36 = vadd.f32 %v1758_v33, %v1567_v34  ;;  %v1569_v37 = vpop.f32.mrb[13].mxu0 }
 0x337   :  { %v1570_v38 = vpop.f32.mrb[14].mxu0 }
 0x338   :  { %v1571_v39 = vpop.f32.mrb[15].mxu0  ;;  %v1587_v40 = vsel %vm2499_vm3, %v1568_v36, -1e+30  ;;  %v1578_v46 = vand.u32 2147483647, %v1568_v36  ;;  %vm1582_vm4 = vcmp.ge.f32.partialorder %v1568_v36, 0.0 }
 0x339   :  { %1588 = vmax.xlane.f32.xlu0 %v1587_v40 }
 0x33a   :  { %v1579_v47 = vsub.f32 0.0, %v1578_v46 }
 0x33c   :  { %v1580_v48 = vmul.f32 1.442695, %v1579_v47 }
 0x3c6   :  { %v1589_v41 = vpop.xlane.xlu0 %1588 }
 0x3c7   :  { %v1590_v42 = vsub.f32 %v1587_v40, %v1589_v41 }
 0x3c9   :  { %v1591_v43 = vmul.f32 1.442695, %v1590_v42 }
 0x3cb   :  { %2078 = vpow2.f32 %v1591_v43 }
 0x3cc   :  { %2080 = vpow2.f32 %v1580_v48 }
 0x3d5   :  { %v2079_v44 = vpop.eup %2078 }
 0x3d6   :  { %v1593_v45 = vsel %vm2499_vm3, %v2079_v44, 0.0  ;;  %v2081_v49 = vpop.eup %2080 }
 0x3d7   :  { %1594 = vadd.xlane.f32.xlu0 %v1593_v45  ;;  %v1584_v50 = vadd.f32 1.0, %v2081_v49  ;;  %v1583_v54 = vsel %vm1582_vm4, 1.0, %v2081_v49 }
 0x3d9   :  { %2082 = vrcp.f32 %v1584_v50 }
 0x3e3   :  { %v2083_v52 = vpop.eup %2082 }
 0x3e4   :  { %v1586_v55 = vmul.f32 %v2083_v52, %v1583_v54 }
 0x464   :  { %v1595_v51 = vpop.xlane.xlu0 %1594 }
 0x465   :  { %2084 = vrcp.f32 %v1595_v51 }
 0x46f   :  { %v2085_v53 = vpop.eup %2084 }
 0x470   :  { %v1597_v56 = vmul.f32 %v2085_v53, %v1593_v45 }
 0x472   :  { %v1598_v57 = vsel %vm2499_vm3, %v1597_v56, %v1586_v55 }
 0x473   :  { %1599 = vst [vmem:[#allocation7] sm:$0xff] %v1598_v57 }
 0x474   :  { %2141 = shalt.err (!%p2138_p6)
}
 0x475   :  { %s2142_s25 = scalar_lea.hbm %s2530_s9, 128 }
 0x476   :  { %p2143_p7 = scmp.ne.s32.totalorder %s2530_s9, %s2142_s25  ;;  %p2146_p8 = scmp.lt.u32.totalorder %s2142_s25, %s2530_s9 }
 0x478   :  { %p2148_p9 = pnand %p2146_p8, %p2143_p7 }
 0x47a   :  { %2151 = shalt.err (!%p2148_p9)
}
 0x47b   :  { %1609 = dma.vmem_to_hbm [thread:$0]  %s1607_s22, 128, %s2530_s9, [#allocation4]  }
 0x47c   :  { %2156 = dma.done.wait [#allocation4], 128  }
 0x47d   :  { %2157 = vsyncadd [#allocation4], 4294967168 }
 0x47e   :  { %1613 = vsyncpa [#allocation3], 1 }
 0x47f   :  { %1614 = vsyncpa [#allocation6], 1 }
 0x480   :  { %1615 = vsyncpa [#allocation4], 1 }

</bundles_post_ra>
